<compile_context>
chip_gen: v5e
topology: v5e:2x2
jax: 0.10.0
libtpu: 0.0.40
codegen_flags: <defaults>
</compile_context>

<pallas_src>
import functools

import jax
import jax.numpy as jnp
from jax import lax
from jax.experimental import pallas as pl
from jax.experimental.pallas import tpu as pltpu


def tcn_block_kernel(xcol_ref, w_ref, bn_ref, o_ref, *, n_valid, c_out, eps):
    # ---- single fused MXU matmul: conv rows [0:C_out], residual rows [C_out:2*C_out] ----
    yr = jnp.dot(w_ref[...], xcol_ref[...],
                 preferred_element_type=jnp.float32)          # (2*C_out, Lp) f32
    y = yr[:c_out]                                            # conv path     (C_out, Lp)
    res = yr[c_out:]                                          # residual path (C_out, Lp)

    # Stacked BN/PReLU params: rows [gamma | beta | alpha], each (C_out, 1).
    params = bn_ref[...]
    gamma = params[0:c_out]
    beta = params[c_out:2 * c_out]
    alpha = params[2 * c_out:3 * c_out]

    # ---- BatchNorm1d (training-mode forward: batch mean, biased variance) ----
    # Padded lane columns of x_col are zero -> those columns of y are exactly zero, so the
    # unmasked lane sum equals the sum over the n_valid real columns (= B*T_out).
    inv_n = 1.0 / float(n_valid)
    mean = jnp.sum(y, axis=1, keepdims=True) * inv_n          # (C_out, 1)
    centered = y - mean                                       # reused below
    lane = lax.broadcasted_iota(jnp.int32, y.shape, 1)
    c_m = jnp.where(lane < n_valid, centered, 0.0)            # mask only the variance pass
    var = jnp.sum(c_m * c_m, axis=1, keepdims=True) * inv_n   # biased variance
    scale = gamma * lax.rsqrt(var + eps)                      # fold gamma on the narrow shape
    y_bn = centered * scale + beta

    # ---- PReLU (per-channel learnable slope) + residual add ----
    act = jnp.where(y_bn > 0, y_bn, alpha * y_bn)
    o_ref[...] = (act + res).astype(o_ref.dtype)              # lane-dense unmasked store


def tcn_block(x, w1, w_res, gamma, beta, alpha, *, kernel_size, dilation, eps=1e-5):
    """x: (B, C_in, T); w1: (C_out, C_in, K) [PyTorch Conv1d layout, bias=False];
    w_res: (C_out,) grouped (groups=C_in) 1x1 conv weights; gamma/beta/alpha: (C_out, 1)."""
    B, C_in, T = x.shape
    C_out, _, K = w1.shape
    assert K == kernel_size and C_out % C_in == 0
    ratio = C_out // C_in
    T_out = T - dilation * (K - 1)
    L = B * T_out
    LANES = 128
    Lp = ((L + LANES - 1) // LANES) * LANES                   # lane-dense padded width

    # ---- wrapper-side layout plumbing (no compute) ----
    # im2col: stack the K dilated tap slices along the contraction axis, fold B into lanes.
    taps = [x[:, :, k * dilation: k * dilation + T_out] for k in range(K)]  # each (B, C_in, T_out)
    x_col = jnp.concatenate(taps, axis=1)                     # (B, K*C_in, T_out)
    x_col = jnp.transpose(x_col, (1, 0, 2)).reshape(K * C_in, L)
    x_col = jnp.pad(x_col, ((0, 0), (0, Lp - L))).astype(jnp.bfloat16)      # (K*C_in, Lp)

    # Combined weight: conv taps flattened as [o, k*C_in + c] = w1[o, c, k]; residual rows use
    # only the last tap's C_in block (causal crop == k=K-1 slice), one nonzero per row.
    w_conv = jnp.transpose(w1, (0, 2, 1)).reshape(C_out, K * C_in)
    w_res_rows = jnp.zeros((C_out, K * C_in), jnp.float32).at[
        jnp.arange(C_out), (K - 1) * C_in + jnp.arange(C_out) // ratio].set(w_res)
    w_all = jnp.concatenate([w_conv, w_res_rows], axis=0).astype(jnp.bfloat16)  # (2*C_out, K*C_in)

    # Stack BN/PReLU params into one slab -> single tiny DMA instead of three.
    bn_params = jnp.concatenate([gamma, beta, alpha], axis=0).astype(jnp.float32)  # (3*C_out, 1)

    kern = functools.partial(tcn_block_kernel, n_valid=L, c_out=C_out, eps=eps)
    out_p = pl.pallas_call(
        kern,
        out_shape=jax.ShapeDtypeStruct((C_out, Lp), x.dtype),
        grid=(1,),
        in_specs=[
            pl.BlockSpec((K * C_in, Lp), lambda i: (0, 0)),
            pl.BlockSpec((2 * C_out, K * C_in), lambda i: (0, 0)),
            pl.BlockSpec((3 * C_out, 1), lambda i: (0, 0)),
        ],
        out_specs=pl.BlockSpec((C_out, Lp), lambda i: (0, 0)),
        compiler_params=pltpu.CompilerParams(dimension_semantics=("arbitrary",)),
    )(x_col, w_all, bn_params)

    # Un-pad and restore (B, C_out, T_out): column index was b*T_out + t.
    return jnp.transpose(out_p[:, :L].reshape(C_out, B, T_out), (1, 0, 2))


def tcn_block_ref(x, w1, w_res, gamma, beta, alpha, *, kernel_size, dilation,
                  eps=1e-5, matmul_dtype=None):
    """Pure-JAX reference mirroring the PyTorch forward.  If matmul_dtype is set, the
    conv / residual operands are rounded to that dtype (to match bf16 MXU operands)."""
    B, C_in, T = x.shape
    C_out, _, K = w1.shape
    ratio = C_out // C_in
    T_out = T - dilation * (K - 1)

    xm = x if matmul_dtype is None else x.astype(matmul_dtype).astype(jnp.float32)
    wm = w1 if matmul_dtype is None else w1.astype(matmul_dtype).astype(jnp.float32)
    wr = w_res if matmul_dtype is None else w_res.astype(matmul_dtype).astype(jnp.float32)

    y = jnp.zeros((B, C_out, T_out), jnp.float32)
    for k in range(K):
        xs = xm[:, :, k * dilation: k * dilation + T_out]
        y = y + jnp.einsum("oc,bct->bot", wm[:, :, k], xs,
                           precision=lax.Precision.HIGHEST)
    mean = jnp.mean(y, axis=(0, 2), keepdims=True)
    var = jnp.mean((y - mean) ** 2, axis=(0, 2), keepdims=True)
    y = (y - mean) * lax.rsqrt(var + eps)
    y = y * gamma[None] + beta[None]
    y = jnp.where(y > 0, y, alpha[None] * y)
    res = wr[None, :, None] * xm[:, jnp.arange(C_out) // ratio, T - T_out:]
    return y + res


if __name__ == "__main__":
    # TCNBlock(in_ch=4, out_ch=8, kernel_size=3, dilation=2), x: (B=2, 4, T=32)
    B, C_in, C_out, K, dilation, T = 2, 4, 8, 3, 2, 32
    T_out = T - dilation * (K - 1)

    key = jax.random.PRNGKey(0)
    ks = jax.random.split(key, 5)
    x = jax.random.normal(ks[0], (B, C_in, T), jnp.float32)

    # conv1 weight, PyTorch layout (out_ch, in_ch, K), bias=False
    w1 = 0.3 * jax.random.normal(ks[1], (C_out, C_in, K), jnp.float32)
    # res = Conv1d(in_ch, out_ch, 1, groups=in_ch, bias=False): weight (out_ch, 1, 1) squeezed
    w_res = 0.5 * jax.random.normal(ks[2], (C_out,), jnp.float32)
    # BatchNorm1d affine params (non-trivial) and PReLU slopes (PyTorch default 0.25)
    gamma = 1.0 + 0.1 * jax.random.normal(ks[3], (C_out, 1), jnp.float32)
    beta = 0.1 * jax.random.normal(ks[4], (C_out, 1), jnp.float32)
    alpha = jnp.full((C_out, 1), 0.25, jnp.float32)

    out = tcn_block(x, w1, w_res, gamma, beta, alpha, kernel_size=K, dilation=dilation)
    out = jax.block_until_ready(out)
    assert out.shape == (B, C_out, T_out), out.shape

    # Tight check: same numerics as the kernel (bf16 matmul operands, f32 accumulation).
    ref_bf16 = tcn_block_ref(x, w1, w_res, gamma, beta, alpha,
                             kernel_size=K, dilation=dilation, matmul_dtype=jnp.bfloat16)
    # Loose check: full-f32 PyTorch-style reference (bf16 MXU operands -> relaxed tolerance).
    ref_f32 = tcn_block_ref(x, w1, w_res, gamma, beta, alpha,
                            kernel_size=K, dilation=dilation)

    assert jnp.allclose(out, ref_bf16, rtol=5e-3, atol=5e-3), \
        float(jnp.max(jnp.abs(out - ref_bf16)))
    assert jnp.allclose(out, ref_f32, rtol=5e-2, atol=5e-2), \
        float(jnp.max(jnp.abs(out - ref_f32)))
    print("KERNEL_OK")
</pallas_src>

<mosaic_0001>
module attributes {stable_mosaic.version = 11 : i64} {
  func.func @tcn_block_kernel(%arg0: i32, %arg1: memref<12x128xbf16, #tpu.memory_space<vmem>>, %arg2: memref<16x12xbf16, #tpu.memory_space<vmem>>, %arg3: memref<24x1xf32, #tpu.memory_space<vmem>>, %arg4: memref<8x128xf32, #tpu.memory_space<vmem>>) attributes {dimension_semantics = [#tpu.dimension_semantics<arbitrary>], iteration_bounds = array<i64: 1>, scalar_prefetch = 0 : i64, scratch_operands = 0 : i64, tpu.core_type = #tpu.core_type<tc>, window_params = [{pipeline_mode = #tpu.pipeline_mode<synchronous>, transform_indices = @transform_0, window_bounds = array<i64: 12, 128>}, {pipeline_mode = #tpu.pipeline_mode<synchronous>, transform_indices = @transform_1, window_bounds = array<i64: 16, 12>}, {pipeline_mode = #tpu.pipeline_mode<synchronous>, transform_indices = @transform_2, window_bounds = array<i64: 24, 1>}, {pipeline_mode = #tpu.pipeline_mode<synchronous>, transform_indices = @transform_3, window_bounds = array<i64: 8, 128>}]} {
    %c0 = arith.constant 0 : index
    %c0_0 = arith.constant 0 : index
    %0 = vector.load %arg2[%c0, %c0_0] : memref<16x12xbf16, #tpu.memory_space<vmem>>, vector<16x12xbf16>
    %c0_1 = arith.constant 0 : index
    %c0_2 = arith.constant 0 : index
    %1 = vector.load %arg1[%c0_1, %c0_2] : memref<12x128xbf16, #tpu.memory_space<vmem>>, vector<12x128xbf16>
    %cst = arith.constant dense<0.000000e+00> : vector<16x128xf32>
    %2 = tpu.matmul %0, %1, %cst {dimension_numbers = #tpu.dot_dimension_numbers<[1], [0], [0], [1], [0, 0, 1, 1], [], []>} : vector<16x12xbf16>, vector<12x128xbf16>, vector<16x128xf32> -> vector<16x128xf32>
    %3 = vector.extract_strided_slice %2 {offsets = [0, 0], sizes = [8, 128], strides = [1, 1]} : vector<16x128xf32> to vector<8x128xf32>
    %4 = vector.extract_strided_slice %2 {offsets = [8, 0], sizes = [8, 128], strides = [1, 1]} : vector<16x128xf32> to vector<8x128xf32>
    %c0_3 = arith.constant 0 : index
    %c0_4 = arith.constant 0 : index
    %5 = vector.load %arg3[%c0_3, %c0_4] : memref<24x1xf32, #tpu.memory_space<vmem>>, vector<24x1xf32>
    %6 = vector.extract_strided_slice %5 {offsets = [0, 0], sizes = [8, 1], strides = [1, 1]} : vector<24x1xf32> to vector<8x1xf32>
    %7 = vector.extract_strided_slice %5 {offsets = [8, 0], sizes = [8, 1], strides = [1, 1]} : vector<24x1xf32> to vector<8x1xf32>
    %8 = vector.extract_strided_slice %5 {offsets = [16, 0], sizes = [8, 1], strides = [1, 1]} : vector<24x1xf32> to vector<8x1xf32>
    %cst_5 = arith.constant dense<0.000000e+00> : vector<8xf32>
    %9 = vector.multi_reduction <add>, %3, %cst_5 [1] : vector<8x128xf32> to vector<8xf32>
    %10 = vector.shape_cast %9 : vector<8xf32> to vector<8x1xf32>
    %cst_6 = arith.constant 0.0178571437 : f32
    %11 = vector.broadcast %cst_6 : f32 to vector<8x1xf32>
    %12 = arith.mulf %10, %11 : vector<8x1xf32>
    %13 = vector.broadcast %12 : vector<8x1xf32> to vector<8x128xf32>
    %14 = arith.subf %3, %13 : vector<8x128xf32>
    %15 = tpu.iota {dimensions = array<i32: 1>} : vector<8x128xi32>
    %c56_i32 = arith.constant 56 : i32
    %16 = vector.broadcast %c56_i32 : i32 to vector<8x128xi32>
    %17 = arith.cmpi slt, %15, %16 : vector<8x128xi32>
    %cst_7 = arith.constant 0.000000e+00 : f32
    %18 = vector.broadcast %cst_7 : f32 to vector<8x128xf32>
    %19 = arith.select %17, %14, %18 : vector<8x128xi1>, vector<8x128xf32>
    %20 = arith.mulf %19, %19 : vector<8x128xf32>
    %cst_8 = arith.constant dense<0.000000e+00> : vector<8xf32>
    %21 = vector.multi_reduction <add>, %20, %cst_8 [1] : vector<8x128xf32> to vector<8xf32>
    %22 = vector.shape_cast %21 : vector<8xf32> to vector<8x1xf32>
    %cst_9 = arith.constant 0.0178571437 : f32
    %23 = vector.broadcast %cst_9 : f32 to vector<8x1xf32>
    %24 = arith.mulf %22, %23 : vector<8x1xf32>
    %cst_10 = arith.constant 9.99999974E-6 : f32
    %25 = vector.broadcast %cst_10 : f32 to vector<8x1xf32>
    %26 = arith.addf %24, %25 : vector<8x1xf32>
    %27 = math.rsqrt %26 : vector<8x1xf32>
    %28 = arith.mulf %6, %27 : vector<8x1xf32>
    %29 = vector.broadcast %28 : vector<8x1xf32> to vector<8x128xf32>
    %30 = arith.mulf %14, %29 : vector<8x128xf32>
    %31 = vector.broadcast %7 : vector<8x1xf32> to vector<8x128xf32>
    %32 = arith.addf %30, %31 : vector<8x128xf32>
    %cst_11 = arith.constant 0.000000e+00 : f32
    %33 = vector.broadcast %cst_11 : f32 to vector<8x128xf32>
    %34 = arith.cmpf ogt, %32, %33 : vector<8x128xf32>
    %35 = vector.broadcast %8 : vector<8x1xf32> to vector<8x128xf32>
    %36 = arith.mulf %35, %32 : vector<8x128xf32>
    %37 = arith.select %34, %32, %36 : vector<8x128xi1>, vector<8x128xf32>
    %38 = arith.addf %37, %4 : vector<8x128xf32>
    %c0_12 = arith.constant 0 : index
    %c0_13 = arith.constant 0 : index
    %39 = vector.load %arg4[%c0_12, %c0_13] : memref<8x128xf32, #tpu.memory_space<vmem>>, vector<8x128xf32>
    tpu.vector_store %arg4[%c0_12, %c0_13], %38 {strides = array<i32>} : memref<8x128xf32, #tpu.memory_space<vmem>>, vector<8x128xf32>,
    return
  }
  func.func @transform_0(%arg0: i32) -> (i32, i32) {
    %c0_i32 = arith.constant 0 : i32
    %c0_i32_0 = arith.constant 0 : i32
    %c0_i32_1 = arith.constant 0 : i32
    return %c0_i32, %c0_i32_0 : i32, i32
  }
  func.func @transform_1(%arg0: i32) -> (i32, i32) {
    %c0_i32 = arith.constant 0 : i32
    %c0_i32_0 = arith.constant 0 : i32
    %c0_i32_1 = arith.constant 0 : i32
    return %c0_i32, %c0_i32_0 : i32, i32
  }
  func.func @transform_2(%arg0: i32) -> (i32, i32) {
    %c0_i32 = arith.constant 0 : i32
    %c0_i32_0 = arith.constant 0 : i32
    %c0_i32_1 = arith.constant 0 : i32
    return %c0_i32, %c0_i32_0 : i32, i32
  }
  func.func @transform_3(%arg0: i32) -> (i32, i32) {
    %c0_i32 = arith.constant 0 : i32
    %c0_i32_0 = arith.constant 0 : i32
    %c0_i32_1 = arith.constant 0 : i32
    return %c0_i32, %c0_i32_0 : i32, i32
  }
}

</mosaic_0001>

<bundles_post_ra>
// kernel: tpu_custom_call.1
= control target key start
LH: loop header
LB: loop body
LE: loop exit
PB: predicated region body
PF: predicated region fallthrough
CT: control target
= control target key end

     0   :  { %vm34_vm0 = vcmask 1045504   ;;  %s204_s0 = inlined_call_operand.vmem [shape: bf16[12,128], index: 0, kind: input, shape index: {}]   ;;  %s205_s1 = inlined_call_operand.vmem [shape: bf16[16,12], index: 1, kind: input, shape index: {}]   ;;  %s206_s2 = inlined_call_operand.vmem [shape: f32[24,1], index: 2, kind: input, shape index: {}]   ;;  %s207_s3 = inlined_call_operand.hbm [shape: f32[8,128], index: 3, kind: output, shape index: {}]  }
   0x1   :  { %v123_v0 = vld [vmem:[%s204_s0] sm:$0xf]  ;;  %v127_v1 = vld [vmem:[%s204_s0] sm:$0x30] }
   0x2   :  { %v124_v2 = vor.u32 %v127_v1, %v123_v0 }
   0x3   :  { %8 = vsyncpa [#allocation3], 0  ;;  %v126_v4 = vld [vmem:[%s205_s1] sm:$0xff]  ;;  %vm30_vm1 = vcmask 97280   ;;  %v59_v6 = vlaneseq  ;;  %v161_v13 = vmov 0   ;;  %v54_v16 = vld [vmem:[%s206_s2 + $0x10] sm:$0xff] }
   0x4   :  { %v36_v3 = vsel %vm34_vm0, %v124_v2, 0  ;;  %130 = vset.pattern.permute.xlu1 %v161_v13  ;;  %131 = vset.pattern.permute.xlu2 %v161_v13  ;;  %v52_v23 = vld [vmem:[%s206_s2] sm:$0xff]  ;;  %v53_v27 = vld [vmem:[%s206_s2 + $0x8] sm:$0xff]  ;;  %s162_s22 = smov [#allocation2]   ;;  %s108_s26 = sshll.u32 %s207_s3, 4  ;;  %s109_s26 = int_to_ptr.hbm [resolvable:$true] %s108_s26 }
   0x5   :  { %45 = vmatpush.bf16.msra.mxu0 %v36_v3  ;;  %v60_v7 = vand.u32 127, %v59_v6  ;;  %132 = vset.pattern.permute.xlu0 %v161_v13  ;;  %s106_s23 = sshll.u32 %s162_s22, 4  ;;  %s107_s23 = int_to_ptr.vmem [resolvable:$true] %s106_s23 }
   0x6   :  { %94 = vperm.xlu2 %131, %v54_v16  }
   0x7   :  { %vm61_vm2 = vcmp.lt.s32.totalorder %v60_v7, 56 }
   0x8   :  { %125 = vmatmul.msk.bf16.vlgmr.msra.gmra.mxu0 %vm30_vm1, %v126_v4 }
  0x60   :  { %v95_v31 = vpop.permute.xlu2 %94 }
  0x85   :  { %v47_v5 = vpop.f32.mrf.mxu0 }
  0x86   :  { %55 = vadd.xlane.f32.xlu0 %v47_v5 }
  0x8d   :  { %v49_v34 = vpop.f32.mrf.mxu0 }
  0xf9   :  { %v56_v8 = vpop.xlane.xlu0 %55 }
  0xfa   :  { %v57_v9 = vmul.f32 0.017857144, %v56_v8 }
  0xfc   :  { %v58_v10 = vsub.f32 %v47_v5, %v57_v9 }
  0xfe   :  { %v62_v11 = vsel %vm61_vm2, %v58_v10, 0.0 }
  0xff   :  { %v63_v12 = vmul.f32 %v62_v11, %v62_v11 }
 0x101   :  { %64 = vadd.xlane.f32.xlu0 %v63_v12 }
 0x174   :  { %v65_v14 = vpop.xlane.xlu0 %64 }
 0x175   :  { %v66_v15 = vmul.f32 0.017857144, %v65_v14 }
 0x177   :  { %v67_v17 = vadd.f32 1e-05, %v66_v15 }
 0x179   :  { %133 = vrsqrt.f32 %v67_v17  ;;  %vm74_vm4 = vweird.f32 %v67_v17 }
 0x17f   :  { %v134_v18 = vpop.eup %133 }
 0x180   :  { %v69_v19 = vmul.f32 %v134_v18, %v67_v17  ;;  %vm75_vm3 = vweird.f32 %v134_v18 }
 0x181   :  { %vm76_vm5 = vmor %vm74_vm4, %vm75_vm3 }
 0x182   :  { %v70_v20 = vmul.f32 %v134_v18, %v69_v19 }
 0x184   :  { %v71_v21 = vmul.f32 0.5, %v70_v20 }
 0x186   :  { %v72_v22 = vsub.f32 1.5, %v71_v21 }
 0x188   :  { %v73_v24 = vmul.f32 %v134_v18, %v72_v22 }
 0x18a   :  { %v77_v25 = vsel %vm76_vm5, %v134_v18, %v73_v24 }
 0x18b   :  { %v78_v26 = vmul.f32 %v77_v25, %v52_v23 }
 0x18d   :  { %81 = vperm.xlu1 %130, %v78_v26  }
 0x195   :  { %87 = vperm.xlu1 %130, %v53_v27  }
 0x1ff   :  { %v82_v28 = vpop.permute.xlu1 %81 }
 0x200   :  { %v84_v29 = vmul.f32 %v82_v28, %v58_v10 }
 0x207   :  { %v88_v30 = vpop.permute.xlu1 %87 }
 0x208   :  { %v90_v32 = vadd.f32 %v88_v30, %v84_v29 }
 0x20a   :  { %vm91_vm6 = vcmp.gt.f32.partialorder %v90_v32, 0.0  ;;  %v97_v33 = vmul.f32 %v95_v31, %v90_v32 }
 0x20c   :  { %v98_v35 = vsel %vm91_vm6, %v90_v32, %v97_v33 }
 0x20d   :  { %v99_v36 = vadd.f32 %v98_v35, %v49_v34 }
 0x20f   :  { %100 = vst [vmem:[#allocation2] sm:$0xff] %v99_v36 }
 0x210   :  { %111 = dma.vmem_to_hbm [thread:$0]  %s107_s23, 128, %s109_s26, [#allocation3]  }
 0x211   :  { %159 = dma.done.wait [#allocation3], 128  }
 0x212   :  { %160 = vsyncadd [#allocation3], 4294967168 }
 0x213   :  { %116 = vsyncpa [#allocation3], 1 }

</bundles_post_ra>
